<compile_context>
chip_gen: v7x
topology: tpu7x:2x2x1
jax: 0.10.0
libtpu: 0.0.40
codegen_flags: <defaults>
</compile_context>

<pallas_src>
import jax
import jax.numpy as jnp
from jax.experimental import pallas as pl
from jax.experimental.pallas import tpu as pltpu

block_size = 8     # T
n_embed = 32       # C
head_size = 16     # H


def head_kernel(x_ref, wqkv_ref, o_ref):
    # x_ref: (Bb, T, C)   wqkv_ref: (3H, C)  [nn.Linear (out,in) layout]
    # o_ref: (Bb, T, H)
    Bb, T, C = x_ref.shape
    H = o_ref.shape[-1]

    x = x_ref[...]                     # f32 activations
    w = wqkv_ref[...]                  # f32 fused weights (3H, C)

    # Fused q/k/v projection: single MXU pass, contracting on C (last axis of
    # both operands) -> no transposed copy of the weight is materialized.
    x2 = x.reshape(Bb * T, C)
    qkv = jax.lax.dot_general(
        x2, w,
        dimension_numbers=(((1,), (1,)), ((), ())),
        preferred_element_type=jnp.float32,
    ).reshape(Bb, T, 3 * H)            # (Bb, T, 3H)
    q = qkv[..., 0 * H:1 * H]
    k = qkv[..., 1 * H:2 * H]
    v = qkv[..., 2 * H:3 * H]

    # Attention scores: contract on the head dim of both q and k (no k.T).
    scale = C ** (-0.5)                # NOTE: reference scales by n_embed (C)
    wei = jnp.einsum('bqd,bkd->bqk', q, k,
                     preferred_element_type=jnp.float32) * scale  # (Bb, T, T)

    # Causal mask (tril == 0 -> -inf), generated in-kernel.
    row = jax.lax.broadcasted_iota(jnp.int32, (Bb, T, T), 1)
    col = jax.lax.broadcasted_iota(jnp.int32, (Bb, T, T), 2)
    wei = jnp.where(col <= row, wei, -jnp.inf)

    # Softmax along the last axis, f32. Normalization uses the EUP reciprocal
    # (separate VLIW slot) instead of a VALU divide.
    wei = wei - jnp.max(wei, axis=-1, keepdims=True)
    p = jnp.exp(wei)
    inv = pl.reciprocal(jnp.sum(p, axis=-1, keepdims=True), approx=True)
    p = p * inv

    out = jnp.einsum('bqk,bkd->bqd', p, v,
                     preferred_element_type=jnp.float32)          # (Bb, T, H)
    o_ref[...] = out.astype(o_ref.dtype)


def fuse_qkv_weights(w_key, w_query, w_value):
    """Fuse nn.Linear weights (each (H, C)) into a single (3H, C) matrix.

    Done once at init time (analogous to storing fused weights in the module),
    so no per-call transpose/concat cost. Slice order inside the kernel is
    [q ; k ; v].
    """
    return jnp.concatenate([w_query, w_key, w_value], axis=0)


def _pick_block_b(B, T):
    """Batch elements per grid step: ~128 rows/block, but keep >=2 blocks
    (marked 'parallel') when B allows so both v7x TensorCores get work."""
    target = max(1, 128 // T)
    if B >= 2:
        target = min(target, max(1, B // 2))
    for bb in range(min(target, B), 0, -1):
        if B % bb == 0:
            return bb
    return 1


def head_forward(x, w_qkv, block_b=None):
    """x: (B, T, C) float32; w_qkv: (3H, C) fused [q;k;v] nn.Linear weights."""
    B, T, C = x.shape
    H3, C2 = w_qkv.shape
    assert C2 == C and H3 % 3 == 0
    H = H3 // 3

    if block_b is None:
        block_b = _pick_block_b(B, T)
    assert B % block_b == 0
    grid_b = B // block_b

    return pl.pallas_call(
        head_kernel,
        out_shape=jax.ShapeDtypeStruct((B, T, H), x.dtype),
        grid_spec=pltpu.PrefetchScalarGridSpec(
            num_scalar_prefetch=0,
            grid=(grid_b,),
            in_specs=[
                pl.BlockSpec((block_b, T, C), lambda b: (b, 0, 0)),
                pl.BlockSpec((H3, C), lambda b: (0, 0)),
            ],
            out_specs=pl.BlockSpec((block_b, T, H), lambda b: (b, 0, 0)),
        ),
        compiler_params=pltpu.CompilerParams(
            dimension_semantics=("parallel",)),
    )(x, w_qkv)


if __name__ == "__main__":
    key = jax.random.PRNGKey(0)
    kx, kk, kq, kv = jax.random.split(key, 4)

    B, T, C, H = 16, block_size, n_embed, head_size
    x = jax.random.normal(kx, (B, T, C), dtype=jnp.float32)

    # deterministic init mimicking nn.Linear default: U(-1/sqrt(C), 1/sqrt(C))
    bound = 1.0 / (C ** 0.5)
    w_key = jax.random.uniform(kk, (H, C), minval=-bound, maxval=bound, dtype=jnp.float32)
    w_query = jax.random.uniform(kq, (H, C), minval=-bound, maxval=bound, dtype=jnp.float32)
    w_value = jax.random.uniform(kv, (H, C), minval=-bound, maxval=bound, dtype=jnp.float32)

    w_qkv = fuse_qkv_weights(w_key, w_query, w_value)   # once, at "init"

    out = head_forward(x, w_qkv)
    jax.block_until_ready(out)

    # pure-JAX reference matching the PyTorch module
    k_ = x @ w_key.T
    q_ = x @ w_query.T
    v_ = x @ w_value.T
    wei = (q_ @ jnp.swapaxes(k_, -2, -1)) * (C ** -0.5)
    mask = jnp.tril(jnp.ones((T, T), dtype=bool))
    wei = jnp.where(mask, wei, -jnp.inf)
    wei = jax.nn.softmax(wei, axis=-1)
    ref = wei @ v_

    assert out.shape == (B, T, H)
    # tolerance accounts for the approximate (EUP) reciprocal in the softmax
    assert jnp.allclose(out, ref, atol=2e-3, rtol=2e-3), \
        float(jnp.max(jnp.abs(out - ref)))
    print("KERNEL_OK")
</pallas_src>

<mosaic_0001>
module attributes {stable_mosaic.version = 11 : i64} {
  func.func @head_kernel(%arg0: i32, %arg1: memref<8x8x32xf32, #tpu.memory_space<vmem>>, %arg2: memref<48x32xf32, #tpu.memory_space<vmem>>, %arg3: memref<8x8x16xf32, #tpu.memory_space<vmem>>) attributes {dimension_semantics = [#tpu.dimension_semantics<parallel>], iteration_bounds = array<i64: 2>, scalar_prefetch = 0 : i64, scratch_operands = 0 : i64, tpu.core_type = #tpu.core_type<tc>, window_params = [{transform_indices = @transform_0, window_bounds = array<i64: 8, 8, 32>}, {pipeline_mode = #tpu.pipeline_mode<synchronous>, transform_indices = @transform_1, window_bounds = array<i64: 48, 32>}, {transform_indices = @transform_2, window_bounds = array<i64: 8, 8, 16>}]} {
    %c0 = arith.constant 0 : index
    %c0_0 = arith.constant 0 : index
    %c0_1 = arith.constant 0 : index
    %0 = vector.load %arg1[%c0, %c0_0, %c0_1] : memref<8x8x32xf32, #tpu.memory_space<vmem>>, vector<8x8x32xf32>
    %c0_2 = arith.constant 0 : index
    %c0_3 = arith.constant 0 : index
    %1 = vector.load %arg2[%c0_2, %c0_3] : memref<48x32xf32, #tpu.memory_space<vmem>>, vector<48x32xf32>
    %2 = vector.shape_cast %0 : vector<8x8x32xf32> to vector<64x32xf32>
    %cst = arith.constant dense<0.000000e+00> : vector<64x48xf32>
    %3 = tpu.matmul %2, %1, %cst {dimension_numbers = #tpu.dot_dimension_numbers<[1], [1], [0], [0], [0, 0, 1, 0], [], []>} : vector<64x32xf32>, vector<48x32xf32>, vector<64x48xf32> -> vector<64x48xf32>
    %4 = vector.shape_cast %3 : vector<64x48xf32> to vector<8x8x48xf32>
    %5 = vector.extract_strided_slice %4 {offsets = [0, 0, 0], sizes = [8, 8, 16], strides = [1, 1, 1]} : vector<8x8x48xf32> to vector<8x8x16xf32>
    %6 = vector.extract_strided_slice %4 {offsets = [0, 0, 16], sizes = [8, 8, 16], strides = [1, 1, 1]} : vector<8x8x48xf32> to vector<8x8x16xf32>
    %7 = vector.extract_strided_slice %4 {offsets = [0, 0, 32], sizes = [8, 8, 16], strides = [1, 1, 1]} : vector<8x8x48xf32> to vector<8x8x16xf32>
    "tpu.trace_start"() <{level = 10 : i32, message = "bqd,bkd->bqk"}> : () -> ()
    %cst_4 = arith.constant dense<0.000000e+00> : vector<8x8x8xf32>
    %8 = tpu.matmul %5, %6, %cst_4 {dimension_numbers = #tpu.dot_dimension_numbers<[2], [2], [1], [1], [0, 0, 0, 1, 1, 1], [0], [0]>} : vector<8x8x16xf32>, vector<8x8x16xf32>, vector<8x8x8xf32> -> vector<8x8x8xf32>
    "tpu.trace_stop"() : () -> ()
    %cst_5 = arith.constant 0.176776692 : f32
    %9 = vector.broadcast %cst_5 : f32 to vector<8x8x8xf32>
    %10 = arith.mulf %8, %9 : vector<8x8x8xf32>
    %11 = tpu.iota {dimensions = array<i32: 1>} : vector<8x8x8xi32>
    %12 = tpu.iota {dimensions = array<i32: 2>} : vector<8x8x8xi32>
    %13 = arith.cmpi sle, %12, %11 : vector<8x8x8xi32>
    %cst_6 = arith.constant 0xFF800000 : f32
    %14 = vector.broadcast %cst_6 : f32 to vector<8x8x8xf32>
    %15 = arith.select %13, %10, %14 : vector<8x8x8xi1>, vector<8x8x8xf32>
    %cst_7 = arith.constant dense<0xFF800000> : vector<8x8xf32>
    %16 = vector.multi_reduction <maximumf>, %15, %cst_7 [2] : vector<8x8x8xf32> to vector<8x8xf32>
    %17 = vector.shape_cast %16 : vector<8x8xf32> to vector<8x8x1xf32>
    %18 = vector.broadcast %17 : vector<8x8x1xf32> to vector<8x8x8xf32>
    %19 = arith.subf %15, %18 : vector<8x8x8xf32>
    %20 = math.exp %19 : vector<8x8x8xf32>
    %cst_8 = arith.constant dense<0.000000e+00> : vector<8x8xf32>
    %21 = vector.multi_reduction <add>, %20, %cst_8 [2] : vector<8x8x8xf32> to vector<8x8xf32>
    %22 = vector.shape_cast %21 : vector<8x8xf32> to vector<8x8x1xf32>
    %23 = tpu.reciprocal %22 {approx = true} : vector<8x8x1xf32> -> vector<8x8x1xf32>
    %24 = vector.broadcast %23 : vector<8x8x1xf32> to vector<8x8x8xf32>
    %25 = arith.mulf %20, %24 : vector<8x8x8xf32>
    "tpu.trace_start"() <{level = 10 : i32, message = "bqk,bkd->bqd"}> : () -> ()
    %cst_9 = arith.constant dense<0.000000e+00> : vector<8x8x16xf32>
    %26 = tpu.matmul %25, %7, %cst_9 {dimension_numbers = #tpu.dot_dimension_numbers<[2], [1], [1], [2], [0, 0, 0, 1, 1, 2], [0], [0]>} : vector<8x8x8xf32>, vector<8x8x16xf32>, vector<8x8x16xf32> -> vector<8x8x16xf32>
    "tpu.trace_stop"() : () -> ()
    %c0_10 = arith.constant 0 : index
    %c0_11 = arith.constant 0 : index
    %c0_12 = arith.constant 0 : index
    %27 = vector.load %arg3[%c0_10, %c0_11, %c0_12] : memref<8x8x16xf32, #tpu.memory_space<vmem>>, vector<8x8x16xf32>
    tpu.vector_store %arg3[%c0_10, %c0_11, %c0_12], %26 {strides = array<i32>} : memref<8x8x16xf32, #tpu.memory_space<vmem>>, vector<8x8x16xf32>,
    return
  }
  func.func @transform_0(%arg0: i32) -> (i32, i32, i32) {
    %c0_i32 = arith.constant 0 : i32
    %c0_i32_0 = arith.constant 0 : i32
    %c0_i32_1 = arith.constant 0 : i32
    return %arg0, %c0_i32, %c0_i32_0 : i32, i32, i32
  }
  func.func @transform_1(%arg0: i32) -> (i32, i32) {
    %c0_i32 = arith.constant 0 : i32
    %c0_i32_0 = arith.constant 0 : i32
    %c0_i32_1 = arith.constant 0 : i32
    return %c0_i32, %c0_i32_0 : i32, i32
  }
  func.func @transform_2(%arg0: i32) -> (i32, i32, i32) {
    %c0_i32 = arith.constant 0 : i32
    %c0_i32_0 = arith.constant 0 : i32
    %c0_i32_1 = arith.constant 0 : i32
    return %arg0, %c0_i32, %c0_i32_0 : i32, i32, i32
  }
}

</mosaic_0001>

<bundles_post_ra>
// kernel: tpu_custom_call.1
= control target key start
LH: loop header
LB: loop body
LE: loop exit
PB: predicated region body
PF: predicated region fallthrough
CT: control target
= control target key end

     0   :  { %7 = vsyncpa [#allocation3], 0  ;;  %s2583_s0 = inlined_call_operand.hbm [shape: f32[16,8,32], index: 0, kind: input, shape index: {}]   ;;  %s2584_s1 = inlined_call_operand.vmem [shape: f32[48,32], index: 1, kind: input, shape index: {}]   ;;  %s2585_s2 = inlined_call_operand.hbm [shape: f32[16,8,16], index: 2, kind: output, shape index: {}]  }
   0x1   :  { %9 = vsyncpa [#allocation3 + $0x1], 0 }
   0x2   :  { %10 = vsyncpa [#allocation4], 0 }
   0x3   :  { %12 = vsyncpa [#allocation4 + $0x1], 0  ;;  %s2187_s9 = smov 0   ;;  %s2189_s10 = smov 0  }
   0x4   :  { %s2191_s11 = smov 0   ;;  %s2193_s12 = smov 0  }
   0x5 LB: > { %s2208_s13 = sadd.s32 4294967295, %s2160_s12   ;;  %s1756_s14 = sadd.s32 4294967294, %s2160_s12   ;;  %s2160_s12 = sphi %s2193_s12, %s2602_s12   ;;  %s2156_s11 = sphi %s2191_s11, %s2601_s11   ;;  %s2152_s10 = sphi %s2189_s10, %s2600_s10   ;;  %s2148_s9 = sphi %s2187_s9, %s2599_s9  }
   0x6   : > { %s2212_s15 = sadd.s32 1, %s2160_s12   ;;  %s25_s16 = sadd.s32 1, %s2156_s11 }
   0x7   : > { %s22_s17 = ssub.s32 %s2160_s12, %s2212_s15  ;;  %p32_p0 = scmp.ne.s32.totalorder %s2156_s11, %s2152_s10 }
   0x8   : > { %p23_p1 = scmp.eq.s32.totalorder %s22_s17, 0  ;;  %p33_p2 = scmp.eq.s32.totalorder %s2160_s12, 0 }
   0x9   : > { %p38_p3 = scmp.ne.s32.totalorder %s2152_s10, %s2148_s9  ;;  %p39_p4 = scmp.eq.s32.totalorder %s2208_s13, 0 }
   0xa   : > { %s2224_s18 = scalar_select %p23_p1, %s2156_s11, %s25_s16  }
   0xb   : > { %p2226_p5 = por %p33_p2, %p32_p0  ;;  %p2230_p6 = por %p39_p4, %p38_p3 }
   0xc   : > { %p83_p7 = scmp.eq.s32.totalorder %s2208_s13, 1  ;;  %p89_p8 = scmp.eq.s32.totalorder %s1756_s14, 1 }
   0xd   : > { %p1990_p10 = scmp.lt.s32.totalorder %s2160_s12, 2  ;;  %s112_s23 = sand.u32 1, %s2156_s11  }
   0xe   : > { %p2237_p11 = por %p83_p7, %p32_p0  ;;  %p2241_p12 = por %p89_p8, %p38_p3 }
   0xf   : > { %s1808_s24 = sshll.u32 %s2160_s12, 10  ;;  %s1759_s25 = sshll.u32 %s112_s23, 6 }
  0x10   : > { %s2589_s21 = scalar_select %p2237_p11, 1, 0 }
  0x11   : > { %s2590_s22 = scalar_select %p2241_p12, 1, 0 }
  0x12   : > { %s2250_s28 = scalar_lea.hbm %s2583_s0, %s1808_s24  ;;  %s116_s29 = scalar_lea.vmem [#allocation2], %s1759_s25 }
  0x13   : > { %s123_s30 = sshll.u32 %s116_s29, 4  ;;  %p2254_p13 = pnand %p1990_p10, %p2226_p5  ;;  %s2258_s30 = int_to_ptr.vmem [resolvable:$true] %s123_s30 }
  0x14   : > { %s2260_s4 = scalar_lea.sflag [#allocation3], %s112_s23  ;;  %s2064_s5 = scalar_lea.hbm %s2250_s28, 1024 }
  0x15   : > { %p2065_p0 = scmp.ne.s32.totalorder %s2250_s28, %s2064_s5  ;;  %p2066_p1 = pneg %p2254_p13 }
  0x16   : > { %s2069_s8 = scalar_lea.hbm %s2583_s0, 2048  ;;  %p2070_p4 = scmp.lt.u32.totalorder %s2250_s28, %s2583_s0 }
  0x17   : > { %p2067_p2 = pnand %p2066_p1, %p2065_p0  ;;  %p2071_p5 = scmp.lt.u32.totalorder %s2069_s8, %s2064_s5 }
  0x18   : > { %p2073_p8 = scmp.lt.u32.totalorder %s2064_s5, %s2250_s28 }
  0x19   : > { %p2068_p3 = pneg %p2067_p2  ;;  %p2072_p7 = por %p2071_p5, %p2070_p4 }
  0x1b   : > { %p2074_p10 = por %p2073_p8, %p2072_p7 }
  0x1d   : > { %p2075_p9 = pnand %p2074_p10, %p2068_p3 }
  0x1f   : > { %2078 = shalt.err (!%p2075_p9)
}
  0x20   : > { %s2079_s17 = scalar_lea.vmem %s2258_s30, 1024  ;;  %s2162_s19 = smov [#allocation2]  }
  0x21   : > { %p2080_p0 = scmp.ne.s32.totalorder %s2258_s30, %s2079_s17  ;;  %s2084_s23 = sshll.u32 %s2162_s19, 4  ;;  %s2085_s23 = int_to_ptr.vmem [resolvable:$false] %s2084_s23 }
  0x22   : > { %s2086_s24 = scalar_lea.vmem %s2085_s23, 2048  ;;  %p2087_p11 = scmp.lt.s32.totalorder %s2258_s30, %s2085_s23 }
  0x23   : > { %p2082_p2 = pnand %p2080_p0, %p2066_p1  ;;  %p2088_p4 = scmp.lt.s32.totalorder %s2086_s24, %s2079_s17 }
  0x25   : > { %p2083_p12 = pneg %p2082_p2  ;;  %p2089_p5 = por %p2088_p4, %p2087_p11 }
  0x27   : > { %p2090_p7 = pnand %p2089_p5, %p2083_p12 }
  0x29   : > { %2093 = shalt.err (!%p2090_p7)
}
  0x2a   : > { %s2163_s25 = smov 128   ;;  %s2164_s26 = smov 8  }
  0x2b   : > { %1985 = dma.hbm_to_vmem [thread:$0]  (!%p2254_p13), %s2250_s28, 1024, %s2258_s30, %s2260_s4, %s2163_s25, %s2163_s25, %s2164_s26  }
  0x2c   : > { %p1762_p9 = scmp.ge.s32.totalorder %s2160_s12, 1  ;;  %p131_p1 = scmp.lt.s32.totalorder %s2160_s12, 3 }
  0x2e   : > { %p132_p3 = pnand %p1762_p9, %p131_p1 }
  0x2f   : > { %s2291_s27 = sand.u32 (!%p132_p3), 1, %s2152_s10  }
  0x30   : > { %135 = sbr.rel (%p132_p3) target bundleno = 1198 (0x4ae), region = 28  ;;  %s1763_s29 = sshll.u32 (!%p132_p3), %s2291_s27, 6 }
  0x31   : > { %s138_s5 = scalar_lea.sflag (!%p132_p3), [#allocation3], %s2291_s27  ;;  %s2297_s6 = scalar_lea.vmem (!%p132_p3), [#allocation2], %s1763_s29 }
  0x37   : > { %2139 = dma.done.wait (%p2230_p6), %s138_s5, 1024  }
  0x38   : > { %2141 = vsyncadd (%p2230_p6), %s138_s5, 4294966272  ;;  %vm178_vm0 = vcmask 261120   ;;  %v172_v1 = vld [vmem:[%s2584_s1] sm:$0xff]  ;;  %v173_v2 = vld [vmem:[%s2584_s1 + $0x8] sm:$0xff]  ;;  %v2165_v18 = vmov 0.0   ;;  %vm2166_vm2 = vmmov 0   ;;  %v951_v35 = vlaneseq }
  0x39   : > { %vm2305_vm1 = vmpackc.low %vm178_vm0, %vm178_vm0  ;;  %v174_v3 = vld [vmem:[%s2584_s1 + $0x10] sm:$0xff]  ;;  %v1960_v4 = vpack.c.bf16 %v173_v2, %v172_v1  ;;  %v175_v5 = vld [vmem:[%s2584_s1 + $0x18] sm:$0xff]  ;;  %1880 = vmatprep.subr.mxu1 %v2165_v18  ;;  %1882 = vmatprep.mubr.msk.f32.mxu1 %vm2166_vm2, %v2165_v18  ;;  %s2167_s24 = smov 112   ;;  %vm329_vm3 = vcmask 130048   ;;  %vm964_vm5 = vcmask 64512   ;;  %s2168_s25 = smov 96  }
  0x3a   : > { %v1966_v6 = vpack.c.bf16 %v175_v5, %v174_v3  ;;  %v164_v7 = vld [vmem:[%s2297_s6] sm:$0xff]  ;;  %v177_v9 = vld [vmem:[%s2584_s1 + $0x28] sm:$0xff]  ;;  %v166_v12 = vld [vmem:[%s2297_s6 + $0x10] sm:$0xff]  ;;  %v952_v36 = vshrl.u32 %v951_v35, 7  ;;  %v954_v37 = vand.u32 127, %v951_v35  ;;  %s161_s26 = scalar_lea.vmem [#allocation5], %s1763_s29 }
  0x3b   : > { %1962 = vmatprep.subr.msk.bf16.mxu0 %vm2305_vm1, %v1960_v4  ;;  %1868 = vmatprep.mubr.msk.f32.mxu0 %vm178_vm0, %v164_v7  ;;  %v176_v8 = vld [vmem:[%s2584_s1 + $0x20] sm:$0xff]  ;;  %v165_v11 = vld [vmem:[%s2297_s6 + $0x8] sm:$0xff]  ;;  %v167_v13 = vld [vmem:[%s2297_s6 + $0x18] sm:$0xff]  ;;  %s1683_s29 = sshll.u32 %s161_s26, 4  ;;  %s1809_s5 = sshll.u32 %s2208_s13, 10  ;;  %s2532_s29 = int_to_ptr.vmem [resolvable:$true] %s1683_s29 }
  0x3c   : > { %1965 = vmatpush3.bf16.xpose.msk.msra.mxu0 %vm2305_vm1, %v1960_v4  ;;  %v1972_v10 = vpack.c.bf16 %v177_v9, %v176_v8  ;;  %v168_v14 = vld [vmem:[%s2297_s6 + $0x20] sm:$0xff]  ;;  %v169_v15 = vld [vmem:[%s2297_s6 + $0x28] sm:$0xff]  ;;  %v170_v16 = vld [vmem:[%s2297_s6 + $0x30] sm:$0xff]  ;;  %vm2433_vm4 = vcmp.le.s32.totalorder %v954_v37, %v952_v36  ;;  %s2538_s30 = scalar_lea.hbm %s2585_s2, %s1809_s5  ;;  %s1670_s3 = scalar_lea.sflag [#allocation4], %s2291_s27 }
  0x3d   : > { %1968 = vmatprep.subr.msk.bf16.mxu0 %vm2305_vm1, %v1966_v6  ;;  %v171_v17 = vld [vmem:[%s2297_s6 + $0x38] sm:$0xff]  ;;  %s2094_s13 = scalar_lea.vmem %s2532_s29, 1024  ;;  %p2596_p11 = scmp.ne.s32.totalorder %s2589_s21, 0 }
  0x3e   : > { %p2095_p6 = scmp.ne.s32.totalorder %s2532_s29, %s2094_s13  ;;  %s2169_s4 = smov [#allocation5]  }
  0x3f   : > { %s2098_s7 = sshll.u32 %s2169_s4, 4  ;;  %s2099_s7 = int_to_ptr.vmem [resolvable:$false] %s2098_s7 }
  0x40   : > { %p2096_p12 = pnand %p2095_p6, %p2596_p11  ;;  %s2100_s8 = scalar_lea.vmem %s2099_s7, 2048 }
  0x41   : > { %p2101_p8 = scmp.lt.s32.totalorder %s2532_s29, %s2099_s7  ;;  %p2102_p10 = scmp.lt.s32.totalorder %s2100_s8, %s2094_s13 }
  0x42   : > { %p2097_p13 = pneg %p2096_p12 }
  0x43   : > { %p2103_p0 = por %p2102_p10, %p2101_p8 }
  0x44   : > { %1971 = vmatpush3.bf16.xpose.msk.msra.mxu0 %vm2305_vm1, %v1966_v6 }
  0x45   : > { %1974 = vmatprep.subr.msk.bf16.mxu0 %vm2305_vm1, %v1972_v10  ;;  %p2104_p2 = pnand %p2103_p0, %p2097_p13 }
  0x4c   : > { %1977 = vmatpush3.bf16.xpose.msk.msra.mxu0 %vm2305_vm1, %v1972_v10 }
  0x4d   : > { %1925 = vmatprep.subr.mxu0 %v2165_v18 }
  0x53   : > { %1869 = vmatmul.mubr.msk.f32.vlgmr.msra.gmra.mrb[0].mxu0 %vm178_vm0, %v165_v11 }
  0x54   : > { %1871 = vmatprep.mubr.msk.f32.mxu0 %vm178_vm0, %v166_v12 }
  0x57   : > { %1872 = vmatmul.mubr.msk.f32.gmra.mrb[2].mxu0 %vm178_vm0, %v167_v13 }
  0x58   : > { %1874 = vmatprep.mubr.msk.f32.mxu0 %vm178_vm0, %v168_v14 }
  0x5b   : > { %1875 = vmatmul.mubr.msk.f32.gmra.mrb[4].mxu0 %vm178_vm0, %v169_v15 }
  0x5c   : > { %1877 = vmatprep.mubr.msk.f32.mxu0 %vm178_vm0, %v170_v16 }
  0x5f   : > { %1878 = vmatmul.mubr.msk.f32.gmra.mrb[6].mxu0 %vm178_vm0, %v171_v17 }
  0x60   : > { %1927 = vmatprep.mubr.msk.f32.mxu0 %vm2166_vm2, %v2165_v18 }
 0x126   : > { %v2361_v19 = vpop.f32.mrb[0].mxu0 }
 0x127   : > { %v2363_v20 = vpop.f32.mrb[1].mxu0 }
 0x128   : > { %327 = vrot.lane.b32.xlu0 %v2363_v20, %s2167_s24 }
 0x12a   : > { %v2366_v21 = vpop.f32.mrb[2].mxu0 }
 0x12b   : > { %v2368_v22 = vpop.f32.mrb[3].mxu0 }
 0x12c   : > { %405 = vrot.lane.b32.xlu0 %v2361_v19, %s2167_s24  ;;  %482 = vrot.lane.b32.xlu1 %v2368_v22, %s2167_s24 }
 0x12e   : > { %v2372_v23 = vpop.f32.mrb[4].mxu0 }
 0x12f   : > { %v2374_v24 = vpop.f32.mrb[5].mxu0 }
 0x130   : > { %559 = vrot.lane.b32.xlu1 %v2366_v21, %s2167_s24  ;;  %636 = vrot.lane.b32.xlu0 %v2374_v24, %s2167_s24 }
 0x132   : > { %v2378_v25 = vpop.f32.mrb[6].mxu0 }
 0x133   : > { %v2380_v26 = vpop.f32.mrb[7].mxu0 }
 0x134   : > { %713 = vrot.lane.b32.xlu1 %v2372_v23, %s2167_s24  ;;  %790 = vrot.lane.b32.xlu0 %v2380_v26, %s2167_s24 }
 0x138   : > { %867 = vrot.lane.b32.xlu1 %v2378_v25, %s2167_s24 }
 0x19a   : > { %v328_v27 = vpop.permute.xlu0 %327 }
 0x19b   : > { %1881 = vmatpush3.xpose.msk.msra.mxu1 %vm329_vm3, %v328_v27 }
 0x19c   : > { %1885 = vmatprep.subr.mxu1 %v2165_v18 }
 0x19e   : > { %1883 = vmatmul.mubr.msk.f32.vlgmr.msra.gmra.mrb[0].mxu1 %vm329_vm3, %v2363_v20  ;;  %v406_v28 = vpop.permute.xlu0 %405  ;;  %v483_v29 = vpop.permute.xlu1 %482 }
 0x19f   : > { %1886 = vmatpush3.xpose.msk.msra.mxu1 %vm329_vm3, %v406_v28  ;;  %1887 = vmatprep.mubr.msk.f32.mxu1 %vm2166_vm2, %v2165_v18 }
 0x1a0   : > { %1890 = vmatprep.subr.mxu1 %v2165_v18 }
 0x1a2   : > { %1888 = vmatmul.mubr.msk.f32.vlgmr.msra.gmra.mrb[2].mxu1 %vm329_vm3, %v2361_v19  ;;  %v560_v30 = vpop.permute.xlu1 %559  ;;  %v637_v31 = vpop.permute.xlu0 %636 }
 0x1a3   : > { %1891 = vmatpush3.xpose.msk.msra.mxu1 %vm329_vm3, %v483_v29  ;;  %1892 = vmatprep.mubr.msk.f32.mxu1 %vm2166_vm2, %v2165_v18 }
 0x1a4   : > { %1895 = vmatprep.subr.mxu1 %v2165_v18 }
 0x1a6   : > { %1893 = vmatmul.mubr.msk.f32.vlgmr.msra.gmra.mrb[4].mxu1 %vm329_vm3, %v2368_v22  ;;  %v714_v32 = vpop.permute.xlu1 %713  ;;  %v791_v33 = vpop.permute.xlu0 %790 }
 0x1a7   : > { %1896 = vmatpush3.xpose.msk.msra.mxu1 %vm329_vm3, %v560_v30  ;;  %1897 = vmatprep.mubr.msk.f32.mxu1 %vm2166_vm2, %v2165_v18 }
 0x1a8   : > { %1900 = vmatprep.subr.mxu1 %v2165_v18 }
 0x1aa   : > { %1898 = vmatmul.mubr.msk.f32.vlgmr.msra.gmra.mrb[6].mxu1 %vm329_vm3, %v2366_v21  ;;  %v868_v34 = vpop.permute.xlu1 %867 }
 0x1ab   : > { %1901 = vmatpush3.xpose.msk.msra.mxu1 %vm329_vm3, %v637_v31  ;;  %1902 = vmatprep.mubr.msk.f32.mxu1 %vm2166_vm2, %v2165_v18 }
 0x1ac   : > { %1905 = vmatprep.subr.mxu1 %v2165_v18 }
 0x1ae   : > { %1903 = vmatmul.mubr.msk.f32.vlgmr.msra.gmra.mrb[8].mxu1 %vm329_vm3, %v2374_v24 }
 0x1af   : > { %1906 = vmatpush3.xpose.msk.msra.mxu1 %vm329_vm3, %v714_v32  ;;  %1907 = vmatprep.mubr.msk.f32.mxu1 %vm2166_vm2, %v2165_v18 }
 0x1b0   : > { %1910 = vmatprep.subr.mxu1 %v2165_v18 }
 0x1b2   : > { %1908 = vmatmul.mubr.msk.f32.vlgmr.msra.gmra.mrb[10].mxu1 %vm329_vm3, %v2372_v23 }
 0x1b3   : > { %1911 = vmatpush3.xpose.msk.msra.mxu1 %vm329_vm3, %v791_v33  ;;  %1912 = vmatprep.mubr.msk.f32.mxu1 %vm2166_vm2, %v2165_v18 }
 0x1b4   : > { %1915 = vmatprep.subr.mxu1 %v2165_v18 }
 0x1b6   : > { %1913 = vmatmul.mubr.msk.f32.vlgmr.msra.gmra.mrb[12].mxu1 %vm329_vm3, %v2380_v26 }
 0x1b7   : > { %1916 = vmatpush3.xpose.msk.msra.mxu1 %vm329_vm3, %v868_v34  ;;  %1917 = vmatprep.mubr.msk.f32.mxu1 %vm2166_vm2, %v2165_v18 }
 0x1b8   : > { %1920 = vmatprep.subr.mxu1 %v2165_v18 }
 0x1ba   : > { %1918 = vmatmul.mubr.msk.f32.vlgmr.msra.gmra.mrb[14].mxu1 %vm329_vm3, %v2378_v25 }
 0x1bb   : > { %1922 = vmatprep.mubr.msk.f32.mxu1 %vm2166_vm2, %v2165_v18 }
 0x271   : > { %v400_v38 = vpop.f32.mrb[0].mxu1 }
 0x272   : > { %v943_v40 = vmul.f32 0.17677669, %v400_v38  ;;  %v1884_v41 = vpop.f32.mrb[1].mxu1 }
 0x274   : > { %v956_v42 = vsel %vm2433_vm4, %v943_v40, -inf }
 0x275   : > { %v477_v43 = vpop.f32.mrb[2].mxu1  ;;  %v965_v44 = vsel %vm964_vm5, %v956_v42, -inf }
 0x276   : > { %v944_v45 = vmul.f32 0.17677669, %v477_v43  ;;  %v1889_v46 = vpop.f32.mrb[3].mxu1  ;;  %966 = vmax.xlane.f32.xlu0 %v965_v44 }
 0x278   : > { %v957_v47 = vsel %vm2433_vm4, %v944_v45, -inf }
 0x279   : > { %v554_v48 = vpop.f32.mrb[4].mxu1  ;;  %v968_v49 = vsel %vm964_vm5, %v957_v47, -inf }
 0x27a   : > { %v945_v50 = vmul.f32 0.17677669, %v554_v48  ;;  %v1894_v51 = vpop.f32.mrb[5].mxu1  ;;  %969 = vmax.xlane.f32.xlu1 %v968_v49 }
 0x27c   : > { %v958_v52 = vsel %vm2433_vm4, %v945_v50, -inf }
 0x27d   : > { %v631_v53 = vpop.f32.mrb[6].mxu1  ;;  %v971_v54 = vsel %vm964_vm5, %v958_v52, -inf }
 0x27e   : > { %v946_v55 = vmul.f32 0.17677669, %v631_v53  ;;  %v1899_v56 = vpop.f32.mrb[7].mxu1  ;;  %972 = vmax.xlane.f32.xlu0 %v971_v54 }
 0x280   : > { %v959_v57 = vsel %vm2433_vm4, %v946_v55, -inf }
 0x281   : > { %v708_v58 = vpop.f32.mrb[8].mxu1  ;;  %v974_v59 = vsel %vm964_vm5, %v959_v57, -inf }
 0x282   : > { %v947_v60 = vmul.f32 0.17677669, %v708_v58  ;;  %v1904_v61 = vpop.f32.mrb[9].mxu1  ;;  %975 = vmax.xlane.f32.xlu0 %v974_v59 }
 0x284   : > { %v960_v62 = vsel %vm2433_vm4, %v947_v60, -inf }
 0x285   : > { %v785_v63 = vpop.f32.mrb[10].mxu1  ;;  %v977_v0 = vsel %vm964_vm5, %v960_v62, -inf }
 0x286   : > { %v948_v1 = vmul.f32 0.17677669, %v785_v63  ;;  %v1909_v2 = vpop.f32.mrb[11].mxu1  ;;  %978 = vmax.xlane.f32.xlu1 %v977_v0 }
 0x288   : > { %v961_v3 = vsel %vm2433_vm4, %v948_v1, -inf }
 0x289   : > { %v862_v4 = vpop.f32.mrb[12].mxu1  ;;  %v980_v5 = vsel %vm964_vm5, %v961_v3, -inf }
 0x28a   : > { %v949_v6 = vmul.f32 0.17677669, %v862_v4  ;;  %981 = vmax.xlane.f32.xlu0 %v980_v5  ;;  %v1914_v7 = vpop.f32.mrb[13].mxu1 }
 0x28c   : > { %v962_v8 = vsel %vm2433_vm4, %v949_v6, -inf }
 0x28d   : > { %v939_v9 = vpop.f32.mrb[14].mxu1  ;;  %v983_v10 = vsel %vm964_vm5, %v962_v8, -inf }
 0x28e   : > { %v950_v11 = vmul.f32 0.17677669, %v939_v9  ;;  %984 = vmax.xlane.f32.xlu1 %v983_v10  ;;  %v1919_v12 = vpop.f32.mrb[15].mxu1 }
 0x290   : > { %v963_v13 = vsel %vm2433_vm4, %v950_v11, -inf }
 0x291   : > { %v986_v14 = vsel %vm964_vm5, %v963_v13, -inf }
 0x292   : > { %987 = vmax.xlane.f32.xlu0 %v986_v14 }
 0x29f   : > { %1053 = vrot.lane.b32.xlu1 %v2363_v20, %s2168_s25 }
 0x2a3   : > { %1205 = vrot.lane.b32.xlu1 %v2368_v22, %s2168_s25 }
 0x2a7   : > { %1281 = vrot.lane.b32.xlu1 %v2366_v21, %s2168_s25 }
 0x2a8   : > { %1129 = vrot.lane.b32.xlu0 %v2361_v19, %s2168_s25 }
 0x2ab   : > { %1433 = vrot.lane.b32.xlu1 %v2372_v23, %s2168_s25 }
 0x2ac   : > { %1357 = vrot.lane.b32.xlu0 %v2374_v24, %s2168_s25 }
 0x303   : > { %v967_v15 = vpop.xlane.xlu0 %966 }
 0x304   : > { %v989_v16 = vsub.f32 %v956_v42, %v967_v15 }
 0x306   : > { %v997_v17 = vmul.f32 1.442695, %v989_v16 }
 0x307   : > { %v970_v27 = vpop.xlane.xlu1 %969 }
 0x308   : > { %2032 = vpow2.f32 %v997_v17  ;;  %v990_v20 = vsub.f32 %v957_v47, %v970_v27 }
 0x30a   : > { %v999_v28 = vmul.f32 1.442695, %v990_v20 }
 0x30b   : > { %v973_v22 = vpop.xlane.xlu0 %972 }
 0x30c   : > { %2034 = vpow2.f32 %v999_v28  ;;  %v991_v29 = vsub.f32 %v958_v52, %v973_v22 }
 0x30e   : > { %v1001_v21 = vmul.f32 1.442695, %v991_v29 }
 0x30f   : > { %v976_v30 = vpop.xlane.xlu0 %975 }
 0x310   : > { %2036 = vpow2.f32 %v1001_v21  ;;  %v992_v19 = vsub.f32 %v959_v57, %v976_v30 }
 0x312   : > { %v2033_v31 = vpop.eup %2032  ;;  %v1003_v32 = vmul.f32 1.442695, %v992_v19 }
 0x313   : > { %v979_v23 = vpop.xlane.xlu1 %978  ;;  %v1013_v33 = vsel %vm964_vm5, %v2033_v31, 0.0 }
 0x314   : > { %2038 = vpow2.f32 %v1003_v32  ;;  %v993_v24 = vsub.f32 %v960_v62, %v979_v23  ;;  %1014 = vadd.xlane.f32.xlu1 %v1013_v33 }
 0x316   : > { %v2035_v34 = vpop.eup %2034  ;;  %v1005_v35 = vmul.f32 1.442695, %v993_v24 }
 0x317   : > { %v982_v36 = vpop.xlane.xlu0 %981  ;;  %v1016_v37 = vsel %vm964_vm5, %v2035_v34, 0.0 }
 0x318   : > { %2040 = vpow2.f32 %v1005_v35  ;;  %v994_v38 = vsub.f32 %v961_v3, %v982_v36  ;;  %1017 = vadd.xlane.f32.xlu0 %v1016_v37 }
 0x31a   : > { %v2037_v39 = vpop.eup %2036  ;;  %v1007_v40 = vmul.f32 1.442695, %v994_v38 }
 0x31b   : > { %v985_v41 = vpop.xlane.xlu1 %984  ;;  %v1019_v42 = vsel %vm964_vm5, %v2037_v39, 0.0 }
 0x31c   : > { %2042 = vpow2.f32 %v1007_v40  ;;  %v995_v43 = vsub.f32 %v962_v8, %v985_v41  ;;  %1020 = vadd.xlane.f32.xlu1 %v1019_v42 }
 0x31e   : > { %v2476_v44 = vpop.eup %2038  ;;  %v1009_v45 = vmul.f32 1.442695, %v995_v43 }
 0x31f   : > { %v1054_v46 = vpop.permute.xlu1 %1053  ;;  %v988_v47 = vpop.xlane.xlu0 %987  ;;  %v1022_v48 = vsel %vm964_vm5, %v2476_v44, 0.0 }
 0x320   : > { %2044 = vpow2.f32 %v1009_v45  ;;  %v996_v49 = vsub.f32 %v963_v13, %v988_v47  ;;  %1921 = vmatpush3.msra.mxu1 %v1054_v46  ;;  %1023 = vadd.xlane.f32.xlu0 %v1022_v48 }
 0x321   : > { %1930 = vmatprep.subr.mxu1 %v2165_v18 }
 0x322   : > { %v2041_v50 = vpop.eup %2040  ;;  %v1011_v51 = vmul.f32 1.442695, %v996_v49 }
 0x323   : > { %v1130_v52 = vpop.permute.xlu0 %1129  ;;  %v1025_v53 = vsel %vm964_vm5, %v2041_v50, 0.0  ;;  %v1206_v60 = vpop.permute.xlu1 %1205 }
 0x324   : > { %2046 = vpow2.f32 %v1011_v51  ;;  %1026 = vadd.xlane.f32.xlu1 %v1025_v53  ;;  %1926 = vmatpush3.msra.mxu0 %v1130_v52 }
 0x325   : > { %1935 = vmatprep.subr.mxu0 %v2165_v18 }
 0x326   : > { %v2043_v54 = vpop.eup %2042 }
 0x327   : > { %v1028_v55 = vsel %vm964_vm5, %v2043_v54, 0.0  ;;  %v1282_v61 = vpop.permute.xlu1 %1281  ;;  %v1358_v63 = vpop.permute.xlu0 %1357 }
 0x328   : > { %1029 = vadd.xlane.f32.xlu0 %v1028_v55 }
 0x32a   : > { %v2484_v56 = vpop.eup %2044 }
 0x32b   : > { %v1031_v57 = vsel %vm964_vm5, %v2484_v56, 0.0  ;;  %v1434_v62 = vpop.permute.xlu1 %1433 }
 0x32c   : > { %1032 = vadd.xlane.f32.xlu1 %v1031_v57 }
 0x32e   : > { %v2488_v58 = vpop.eup %2046 }
 0x32f   : > { %v1034_v59 = vsel %vm964_vm5, %v2488_v58, 0.0 }
 0x330   : > { %1035 = vadd.xlane.f32.xlu0 %v1034_v59 }
 0x33d   : > { %1585 = vrot.lane.b32.xlu1 %v2378_v25, %s2168_s25 }
 0x346   : > { %1509 = vrot.lane.b32.xlu0 %v2380_v26, %s2168_s25 }
 0x3a1   : > { %v1015_v0 = vpop.xlane.xlu1 %1014 }
 0x3a2   : > { %2048 = vrcp.f32 %v1015_v0 }
 0x3a5   : > { %v1018_v1 = vpop.xlane.xlu0 %1017 }
 0x3a6   : > { %2050 = vrcp.f32 %v1018_v1 }
 0x3a9   : > { %v1021_v2 = vpop.xlane.xlu1 %1020 }
 0x3aa   : > { %2052 = vrcp.f32 %v1021_v2 }
 0x3ac   : > { %v2049_v3 = vpop.eup %2048 }
 0x3ad   : > { %v1045_v4 = vmul.f32 %v2049_v3, %v2033_v31  ;;  %v1024_v5 = vpop.xlane.xlu0 %1023 }
 0x3ae   : > { %2054 = vrcp.f32 %v1024_v5 }
 0x3af   : > { %1923 = vmatmul.mubr.msk.f32.vlgmr.msra.gmra.mrb[16].mxu1 %vm964_vm5, %v1045_v4 }
 0x3b0   : > { %v2051_v25 = vpop.eup %2050  ;;  %1931 = vmatpush3.msra.mxu1 %v1206_v60  ;;  %1932 = vmatprep.mubr.msk.f32.mxu1 %vm2166_vm2, %v2165_v18 }
 0x3b1   : > { %v1046_v26 = vmul.f32 %v2051_v25, %v2035_v34  ;;  %v1027_v6 = vpop.xlane.xlu1 %1026  ;;  %1940 = vmatprep.subr.mxu1 %v2165_v18 }
 0x3b2   : > { %2056 = vrcp.f32 %v1027_v6 }
 0x3b3   : > { %1928 = vmatmul.mubr.msk.f32.vlgmr.msra.gmra.mrb[8].mxu0 %vm964_vm5, %v1046_v26 }
 0x3b4   : > { %v2053_v7 = vpop.eup %2052  ;;  %1936 = vmatpush3.msra.mxu0 %v1282_v61  ;;  %1937 = vmatprep.mubr.msk.f32.mxu0 %vm2166_vm2, %v2165_v18 }
 0x3b5   : > { %v1047_v8 = vmul.f32 %v2053_v7, %v2037_v39  ;;  %v1030_v9 = vpop.xlane.xlu0 %1029  ;;  %1945 = vmatprep.subr.mxu0 %v2165_v18 }
 0x3b6   : > { %2058 = vrcp.f32 %v1030_v9 }
 0x3b7   : > { %1933 = vmatmul.mubr.msk.f32.vlgmr.msra.gmra.mrb[18].mxu1 %vm964_vm5, %v1047_v8 }
 0x3b8   : > { %v2055_v10 = vpop.eup %2054  ;;  %1941 = vmatpush3.msra.mxu1 %v1358_v63  ;;  %1942 = vmatprep.mubr.msk.f32.mxu1 %vm2166_vm2, %v2165_v18 }
 0x3b9   : > { %v1048_v11 = vmul.f32 %v2055_v10, %v2476_v44  ;;  %v1033_v12 = vpop.xlane.xlu1 %1032  ;;  %1950 = vmatprep.subr.mxu1 %v2165_v18 }
 0x3ba   : > { %2060 = vrcp.f32 %v1033_v12 }
 0x3bb   : > { %1938 = vmatmul.mubr.msk.f32.vlgmr.msra.gmra.mrb[10].mxu0 %vm964_vm5, %v1048_v11 }
 0x3bc   : > { %v2057_v13 = vpop.eup %2056  ;;  %1946 = vmatpush3.msra.mxu0 %v1434_v62  ;;  %1947 = vmatprep.mubr.msk.f32.mxu0 %vm2166_vm2, %v2165_v18 }
 0x3bd   : > { %v1049_v14 = vmul.f32 %v2057_v13, %v2041_v50  ;;  %v1036_v15 = vpop.xlane.xlu0 %1035  ;;  %1955 = vmatprep.subr.mxu0 %v2165_v18  ;;  %v1586_v20 = vpop.permute.xlu1 %1585 }
 0x3be   : > { %2062 = vrcp.f32 %v1036_v15 }
 0x3bf   : > { %1943 = vmatmul.mubr.msk.f32.vlgmr.msra.gmra.mrb[20].mxu1 %vm964_vm5, %v1049_v14 }
 0x3c0   : > { %v2059_v16 = vpop.eup %2058  ;;  %1952 = vmatprep.mubr.msk.f32.mxu1 %vm2166_vm2, %v2165_v18 }
 0x3c1   : > { %v1050_v17 = vmul.f32 %v2059_v16, %v2043_v54  ;;  %v1510_v27 = vpop.permute.xlu0 %1509 }
 0x3c2   : > { %1951 = vmatpush3.msra.mxu1 %v1510_v27 }
 0x3c3   : > { %1948 = vmatmul.mubr.msk.f32.vlgmr.msra.gmra.mrb[12].mxu0 %vm964_vm5, %v1050_v17 }
 0x3c4   : > { %v2061_v28 = vpop.eup %2060  ;;  %1956 = vmatpush3.msra.mxu0 %v1586_v20  ;;  %1957 = vmatprep.mubr.msk.f32.mxu0 %vm2166_vm2, %v2165_v18 }
 0x3c5   : > { %v1051_v22 = vmul.f32 %v2061_v28, %v2484_v56 }
 0x3c7   : > { %1953 = vmatmul.mubr.msk.f32.vlgmr.msra.gmra.mrb[22].mxu1 %vm964_vm5, %v1051_v22 }
 0x3c8   : > { %v2063_v29 = vpop.eup %2062 }
 0x3c9   : > { %v1052_v21 = vmul.f32 %v2063_v29, %v2488_v58 }
 0x3cb   : > { %1958 = vmatmul.mubr.msk.f32.vlgmr.msra.gmra.mrb[14].mxu0 %vm964_vm5, %v1052_v21 }
 0x482   : > { %v1125_v30 = vpop.f32.mrb[16].mxu1 }
 0x483   : > { %1661 = vst.msk [vmem:[%s161_s26] sm:$0xff] %vm329_vm3, %v1125_v30  ;;  %v1924_v19 = vpop.f32.mrb[17].mxu1 }
 0x486   : > { %v1201_v31 = vpop.f32.mrb[8].mxu0 }
 0x487   : > { %1662 = vst.msk [vmem:[%s161_s26 + $0x8] sm:$0xff] %vm329_vm3, %v1201_v31  ;;  %v1929_v18 = vpop.f32.mrb[9].mxu0 }
 0x48a   : > { %v1277_v32 = vpop.f32.mrb[18].mxu1 }
 0x48b   : > { %1663 = vst.msk [vmem:[%s161_s26 + $0x10] sm:$0xff] %vm329_vm3, %v1277_v32  ;;  %v1934_v23 = vpop.f32.mrb[19].mxu1 }
 0x48e   : > { %v1353_v33 = vpop.f32.mrb[10].mxu0 }
 0x48f   : > { %1664 = vst.msk [vmem:[%s161_s26 + $0x18] sm:$0xff] %vm329_vm3, %v1353_v33  ;;  %v1939_v24 = vpop.f32.mrb[11].mxu0 }
 0x492   : > { %v1429_v34 = vpop.f32.mrb[20].mxu1 }
 0x493   : > { %1665 = vst.msk [vmem:[%s161_s26 + $0x20] sm:$0xff] %vm329_vm3, %v1429_v34  ;;  %v1944_v35 = vpop.f32.mrb[21].mxu1 }
 0x496   : > { %v1505_v36 = vpop.f32.mrb[12].mxu0 }
 0x497   : > { %1666 = vst.msk [vmem:[%s161_s26 + $0x28] sm:$0xff] %vm329_vm3, %v1505_v36  ;;  %v1949_v37 = vpop.f32.mrb[13].mxu0 }
 0x49a   : > { %v1581_v38 = vpop.f32.mrb[22].mxu1 }
 0x49b   : > { %1667 = vst.msk [vmem:[%s161_s26 + $0x30] sm:$0xff] %vm329_vm3, %v1581_v38  ;;  %v1954_v39 = vpop.f32.mrb[23].mxu1 }
 0x49e   : > { %v1657_v40 = vpop.f32.mrb[14].mxu0 }
 0x49f   : > { %1668 = vst.msk [vmem:[%s161_s26 + $0x38] sm:$0xff] %vm329_vm3, %v1657_v40  ;;  %v1959_v41 = vpop.f32.mrb[15].mxu0 }
 0x4a0   : > { %2107 = shalt.err (!%p2104_p2)
}
 0x4a1   : > { %s2108_s20 = scalar_lea.hbm %s2538_s30, 1024  ;;  %s2112_s17 = scalar_lea.hbm %s2585_s2, 2048 }
 0x4a2   : > { %p2109_p4 = scmp.ne.s32.totalorder %s2538_s30, %s2108_s20  ;;  %p2113_p9 = scmp.lt.u32.totalorder %s2538_s30, %s2585_s2 }
 0x4a3   : > { %p2114_p1 = scmp.lt.u32.totalorder %s2112_s17, %s2108_s20  ;;  %p2116_p6 = scmp.lt.u32.totalorder %s2108_s20, %s2538_s30 }
 0x4a4   : > { %p2110_p5 = pnand %p2109_p4, %p2596_p11 }
 0x4a5   : > { %p2115_p3 = por %p2114_p1, %p2113_p9 }
 0x4a6   : > { %p2111_p7 = pneg %p2110_p5 }
 0x4a7   : > { %p2117_p12 = por %p2116_p6, %p2115_p3 }
 0x4a9   : > { %p2118_p13 = pnand %p2117_p12, %p2111_p7 }
 0x4ab   : > { %2121 = shalt.err (!%p2118_p13)
}
 0x4ac   : > { %s2170_s24 = smov 128   ;;  %s2171_s25 = smov 8  }
 0x4ad   : > { %1980 = dma.vmem_to_hbm [thread:$0]  (%p2596_p11), %s2532_s29, 1024, %s2538_s30, %s1670_s3, %s2170_s24, %s2170_s24, %s2171_s25  }
 0x4ae PF: > { %s1698_s26 = sand.u32 1, %s2148_s9   ;;  %p2597_p8 = scmp.ne.s32.totalorder %s2590_s22, 0 }
 0x4af   : > { %p2598_p10 = scmp.ge.s32.totalorder %s2160_s12, 2  ;;  %s1699_s5 = scalar_lea.sflag [#allocation4], %s1698_s26 }
 0x4b1   : > { %p1987_p0 = pnand %p2598_p10, %p2597_p8 }
 0x4b3   : > { %2143 = dma.done.wait (!%p1987_p0), %s1699_s5, 1024  }
 0x4b4   : > { %2145 = vsyncadd (!%p1987_p0), %s1699_s5, 4294966272  ;;  %p15_p2 = scmp.ge.s32.totalorder %s2212_s15, 4   ;;  %s2599_s9 = smov %s2152_s10 }
 0x4b5   : > { %s2600_s10 = smov %s2156_s11  ;;  %s2601_s11 = smov %s2224_s18 }
 0x4b6   : > { %s2602_s12 = smov %s2212_s15  ;;  %17 = sbr.rel (!%p15_p2) target bundleno = 5 (0x5), region = 73 }
 0x4bd   :  { %1704 = vsyncpa [#allocation3], 1 }
 0x4be   :  { %1706 = vsyncpa [#allocation3 + $0x1], 1 }
 0x4bf   :  { %1707 = vsyncpa [#allocation4], 1 }
 0x4c0   :  { %1709 = vsyncpa [#allocation4 + $0x1], 1 }

</bundles_post_ra>
